<compile_context>
chip_gen: v5e
topology: v5e:2x2
jax: 0.10.0
libtpu: 0.0.40
codegen_flags: <defaults>
</compile_context>

<pallas_src>
import numpy as np
import jax
import jax.numpy as jnp
from jax.experimental import pallas as pl
from jax.experimental.pallas import tpu as pltpu


# -----------------------------------------------------------------------------
# Parameter setup (glue, plain JAX): BasisLinear weight = sum_k coeffs_k * basis_k
# -----------------------------------------------------------------------------
def make_basis_linear_weight(key, c_in, c_out, r_in, r_out, rank=4):
    """Returns W with shape (c_in * r_in, c_out * r_out)  [i.e. (in, out)]."""
    kb, kc = jax.random.split(key)
    basis = jax.random.normal(kb, (rank, r_out, r_in), dtype=jnp.float32)
    basis = basis / jnp.sqrt(jnp.float32(rank * r_in))          # keep scale sane
    gain = jnp.sqrt(2.0 / (c_in * r_in + c_out * r_out))        # xavier-ish gain
    coeffs = gain * jax.random.normal(kc, (c_out, c_in, rank), dtype=jnp.float32)
    # W[c_out, r_out, c_in, r_in] = sum_k coeffs[c_out, c_in, k] * basis[k, r_out, r_in]
    W = jnp.einsum("oik,kpr->opir", coeffs, basis)
    W = W.reshape(c_out * r_out, c_in * r_in)                   # (out, in)
    return jnp.asarray(W.T, dtype=jnp.float32)                  # (in, out)


def prepare_qnet_params(w1, w2, w3):
    """One-time preprocessing: transpose to (out, in) and cast to bf16.

    Done at parameter-build time so the per-call forward pays no cast/pad ops.
    """
    return (jnp.asarray(w1.T, dtype=jnp.bfloat16),   # (h1_dim, obs+act)
            jnp.asarray(w2.T, dtype=jnp.bfloat16),   # (h2_dim, h1_dim)
            jnp.asarray(w3.T, dtype=jnp.bfloat16))   # (out_dim, h2_dim)


# -----------------------------------------------------------------------------
# Pallas kernel: feature-major fc1 -> ReLU -> fc2 -> ReLU -> fc3 (lane-dense out)
# -----------------------------------------------------------------------------
def q_kernel(zt_ref, w1t_ref, w2t_ref, w3t_ref, ot_ref):
    # fc1: (H1, IN) @ (IN, TB) -> (H1, TB), f32 MXU accumulation, f32 ReLU
    h1 = jnp.dot(w1t_ref[...], zt_ref[...], preferred_element_type=jnp.float32)
    h1 = jnp.maximum(h1, 0.0)

    # fc2: single f32->bf16 cast, f32 accumulation, f32 ReLU
    h2 = jnp.dot(w2t_ref[...], h1.astype(jnp.bfloat16),
                 preferred_element_type=jnp.float32)
    h2 = jnp.maximum(h2, 0.0)

    # fc3: (OUT, H2) @ (H2, TB) -> (OUT, TB); lanes run along the batch axis,
    # so the store is a full-lane unmasked vst (no output padding needed).
    ot_ref[...] = jnp.dot(w3t_ref[...], h2.astype(jnp.bfloat16),
                          preferred_element_type=jnp.float32)


def _forward_impl(x, a, w1t, w2t, w3t):
    """x:(B,obs) a:(B,act); w*t: kernel-ready bf16 (out,in).  Returns (B, out_dim) f32."""
    B, obs = x.shape
    act = a.shape[1]
    in_dim = obs + act
    h1_dim, h2_dim, out_dim = w1t.shape[0], w2t.shape[0], w3t.shape[0]

    # Batch tile: multiple of 128, as large as possible (<=512), but keep the
    # grid length >= 2 when B allows it so both v7x TensorCores get work.
    n128 = pl.cdiv(B, 128)
    tb = 128 * max(1, min(4, n128 // 2))
    pb = pl.cdiv(B, tb) * tb
    grid = (pb // tb,)

    # Input glue (fused under jit): concat features, cast bf16, go feature-major,
    # pad batch (padded columns produce garbage rows that are sliced away).
    zt = jnp.concatenate([x, a], axis=1).astype(jnp.bfloat16).T   # (in_dim, B)
    if pb != B:
        zt = jnp.pad(zt, ((0, 0), (0, pb - B)))

    flops = 2 * pb * (in_dim * h1_dim + h1_dim * h2_dim + h2_dim * out_dim)
    bytes_accessed = (pb * in_dim * 2                                          # bf16 z in
                      + (in_dim * h1_dim + h1_dim * h2_dim + h2_dim * out_dim) * 2
                      + pb * out_dim * 4)                                      # f32 out

    out_t = pl.pallas_call(
        q_kernel,
        out_shape=jax.ShapeDtypeStruct((out_dim, pb), jnp.float32),
        grid=grid,
        in_specs=[
            pl.BlockSpec((in_dim, tb), lambda i: (0, i)),       # zᵀ tile (streams)
            pl.BlockSpec((h1_dim, in_dim), lambda i: (0, 0)),   # W1ᵀ (VMEM-resident)
            pl.BlockSpec((h2_dim, h1_dim), lambda i: (0, 0)),   # W2ᵀ (VMEM-resident)
            pl.BlockSpec((out_dim, h2_dim), lambda i: (0, 0)),  # W3ᵀ (VMEM-resident)
        ],
        out_specs=pl.BlockSpec((out_dim, tb), lambda i: (0, i)),
        compiler_params=pltpu.CompilerParams(
            dimension_semantics=("parallel",)),                 # megacore on v7x
        cost_estimate=pl.CostEstimate(flops=flops, transcendentals=0,
                                      bytes_accessed=bytes_accessed),
    )(zt, w1t, w2t, w3t)

    return out_t[:, :B].T                                       # (B, out_dim) f32


invariant_soft_q_forward = jax.jit(_forward_impl)


# -----------------------------------------------------------------------------
# Pure-JAX references
# -----------------------------------------------------------------------------
def reference_forward_f32(x, a, w1, w2, w3):
    z = jnp.concatenate([x, a], axis=-1)
    h1 = jax.nn.relu(z @ w1)
    h2 = jax.nn.relu(h1 @ w2)
    return h2 @ w3


def reference_forward_bf16(x, a, w1, w2, w3):
    """Mirrors the kernel's mixed precision: bf16 operands, f32 accumulation."""
    bf = jnp.bfloat16
    z = jnp.concatenate([x, a], axis=-1).astype(bf)
    h1 = jax.nn.relu(jnp.dot(z, w1.astype(bf), preferred_element_type=jnp.float32))
    h2 = jax.nn.relu(jnp.dot(h1.astype(bf), w2.astype(bf),
                             preferred_element_type=jnp.float32))
    return jnp.dot(h2.astype(bf), w3.astype(bf), preferred_element_type=jnp.float32)


if __name__ == "__main__":
    # Small synthetic config consistent with the module:
    #   obs=6, act=2  -> repr_in : size 8 -> 4   (fc1: channels 1 -> hidden)
    #   repr_out      : size 4 -> 4              (fc2: hidden -> hidden, fc3: hidden -> 1)
    B, OBS, ACT = 200, 6, 2          # padded to 256 rows -> 2 grid steps of TB=128
    HIDDEN = 32
    G = 4                            # repr sizes (flattened hidden dim = 128)

    key = jax.random.PRNGKey(0)
    kx, ka, k1, k2, k3 = jax.random.split(key, 5)

    x = jax.random.normal(kx, (B, OBS), dtype=jnp.float32)
    a = jax.random.normal(ka, (B, ACT), dtype=jnp.float32)

    # fc1: BasisLinear(1, HIDDEN, repr_in)   : (1*(obs+act)) -> (HIDDEN*G)
    w1 = make_basis_linear_weight(k1, c_in=1,      c_out=HIDDEN, r_in=OBS + ACT, r_out=G)
    # fc2: BasisLinear(HIDDEN, HIDDEN, repr_out): (HIDDEN*G) -> (HIDDEN*G)
    w2 = make_basis_linear_weight(k2, c_in=HIDDEN, c_out=HIDDEN, r_in=G,          r_out=G)
    # fc3: BasisLinear(HIDDEN, 1, repr_out)  : (HIDDEN*G) -> (1*G)
    w3 = make_basis_linear_weight(k3, c_in=HIDDEN, c_out=1,      r_in=G,          r_out=G)

    # One-time kernel-ready parameter prep (transpose + bf16 cast).
    w1t, w2t, w3t = prepare_qnet_params(w1, w2, w3)

    q = invariant_soft_q_forward(x, a, w1t, w2t, w3t)
    q = jax.block_until_ready(q)

    # Exact-ish check against a reference using the same bf16 operand precision.
    q_ref = reference_forward_bf16(x, a, w1, w2, w3)
    np.testing.assert_allclose(np.asarray(q), np.asarray(q_ref, dtype=np.float32),
                               rtol=2e-2, atol=2e-3)
    # Loose semantic check against full-f32 math (bf16 quantization noise only).
    q_f32 = reference_forward_f32(x, a, w1, w2, w3)
    np.testing.assert_allclose(np.asarray(q), np.asarray(q_f32), rtol=0.1, atol=5e-3)

    assert q.shape == (B, G) and q.dtype == jnp.float32

    print("KERNEL_OK")
</pallas_src>

<mosaic_0001>
module attributes {stable_mosaic.version = 11 : i64} {
  func.func @q_kernel(%arg0: i32, %arg1: memref<8x128xbf16, #tpu.memory_space<vmem>>, %arg2: memref<128x8xbf16, #tpu.memory_space<vmem>>, %arg3: memref<128x128xbf16, #tpu.memory_space<vmem>>, %arg4: memref<4x128xbf16, #tpu.memory_space<vmem>>, %arg5: memref<4x128xf32, #tpu.memory_space<vmem>>) attributes {dimension_semantics = [#tpu.dimension_semantics<parallel>], iteration_bounds = array<i64: 2>, scalar_prefetch = 0 : i64, scratch_operands = 0 : i64, tpu.core_type = #tpu.core_type<tc>, window_params = [{transform_indices = @transform_0, window_bounds = array<i64: 8, 128>}, {pipeline_mode = #tpu.pipeline_mode<synchronous>, transform_indices = @transform_1, window_bounds = array<i64: 128, 8>}, {pipeline_mode = #tpu.pipeline_mode<synchronous>, transform_indices = @transform_2, window_bounds = array<i64: 128, 128>}, {pipeline_mode = #tpu.pipeline_mode<synchronous>, transform_indices = @transform_3, window_bounds = array<i64: 4, 128>}, {transform_indices = @transform_4, window_bounds = array<i64: 4, 128>}]} {
    %c0 = arith.constant 0 : index
    %c0_0 = arith.constant 0 : index
    %0 = vector.load %arg2[%c0, %c0_0] : memref<128x8xbf16, #tpu.memory_space<vmem>>, vector<128x8xbf16>
    %c0_1 = arith.constant 0 : index
    %c0_2 = arith.constant 0 : index
    %1 = vector.load %arg1[%c0_1, %c0_2] : memref<8x128xbf16, #tpu.memory_space<vmem>>, vector<8x128xbf16>
    %cst = arith.constant dense<0.000000e+00> : vector<128x128xf32>
    %2 = tpu.matmul %0, %1, %cst {dimension_numbers = #tpu.dot_dimension_numbers<[1], [0], [0], [1], [0, 0, 1, 1], [], []>} : vector<128x8xbf16>, vector<8x128xbf16>, vector<128x128xf32> -> vector<128x128xf32>
    %cst_3 = arith.constant 0.000000e+00 : f32
    %3 = vector.broadcast %cst_3 : f32 to vector<128x128xf32>
    %4 = arith.maximumf %2, %3 : vector<128x128xf32>
    %c0_4 = arith.constant 0 : index
    %c0_5 = arith.constant 0 : index
    %5 = vector.load %arg3[%c0_4, %c0_5] : memref<128x128xbf16, #tpu.memory_space<vmem>>, vector<128x128xbf16>
    %6 = arith.truncf %4 : vector<128x128xf32> to vector<128x128xbf16>
    %cst_6 = arith.constant dense<0.000000e+00> : vector<128x128xf32>
    %7 = tpu.matmul %5, %6, %cst_6 {dimension_numbers = #tpu.dot_dimension_numbers<[1], [0], [0], [1], [0, 0, 1, 1], [], []>} : vector<128x128xbf16>, vector<128x128xbf16>, vector<128x128xf32> -> vector<128x128xf32>
    %cst_7 = arith.constant 0.000000e+00 : f32
    %8 = vector.broadcast %cst_7 : f32 to vector<128x128xf32>
    %9 = arith.maximumf %7, %8 : vector<128x128xf32>
    %c0_8 = arith.constant 0 : index
    %c0_9 = arith.constant 0 : index
    %10 = vector.load %arg4[%c0_8, %c0_9] : memref<4x128xbf16, #tpu.memory_space<vmem>>, vector<4x128xbf16>
    %11 = arith.truncf %9 : vector<128x128xf32> to vector<128x128xbf16>
    %cst_10 = arith.constant dense<0.000000e+00> : vector<4x128xf32>
    %12 = tpu.matmul %10, %11, %cst_10 {dimension_numbers = #tpu.dot_dimension_numbers<[1], [0], [0], [1], [0, 0, 1, 1], [], []>} : vector<4x128xbf16>, vector<128x128xbf16>, vector<4x128xf32> -> vector<4x128xf32>
    %c0_11 = arith.constant 0 : index
    %c0_12 = arith.constant 0 : index
    %13 = vector.load %arg5[%c0_11, %c0_12] : memref<4x128xf32, #tpu.memory_space<vmem>>, vector<4x128xf32>
    tpu.vector_store %arg5[%c0_11, %c0_12], %12 {strides = array<i32>} : memref<4x128xf32, #tpu.memory_space<vmem>>, vector<4x128xf32>,
    return
  }
  func.func @transform_0(%arg0: i32) -> (i32, i32) {
    %c0_i32 = arith.constant 0 : i32
    %c0_i32_0 = arith.constant 0 : i32
    return %c0_i32, %arg0 : i32, i32
  }
  func.func @transform_1(%arg0: i32) -> (i32, i32) {
    %c0_i32 = arith.constant 0 : i32
    %c0_i32_0 = arith.constant 0 : i32
    %c0_i32_1 = arith.constant 0 : i32
    return %c0_i32, %c0_i32_0 : i32, i32
  }
  func.func @transform_2(%arg0: i32) -> (i32, i32) {
    %c0_i32 = arith.constant 0 : i32
    %c0_i32_0 = arith.constant 0 : i32
    %c0_i32_1 = arith.constant 0 : i32
    return %c0_i32, %c0_i32_0 : i32, i32
  }
  func.func @transform_3(%arg0: i32) -> (i32, i32) {
    %c0_i32 = arith.constant 0 : i32
    %c0_i32_0 = arith.constant 0 : i32
    %c0_i32_1 = arith.constant 0 : i32
    return %c0_i32, %c0_i32_0 : i32, i32
  }
  func.func @transform_4(%arg0: i32) -> (i32, i32) {
    %c0_i32 = arith.constant 0 : i32
    %c0_i32_0 = arith.constant 0 : i32
    return %c0_i32, %arg0 : i32, i32
  }
}

</mosaic_0001>

<bundles_post_ra>
// kernel: _forward_impl.1
= control target key start
LH: loop header
LB: loop body
LE: loop exit
PB: predicated region body
PF: predicated region fallthrough
CT: control target
= control target key end

     0   :  { %s705_s15 = smov 0   ;;  %s780_s0 = inlined_call_operand.vmem [shape: bf16[8,256], index: 0, kind: input, shape index: {}]   ;;  %s781_s1 = inlined_call_operand.vmem [shape: bf16[128,8], index: 1, kind: input, shape index: {}]   ;;  %s782_s2 = inlined_call_operand.vmem [shape: bf16[128,128], index: 2, kind: input, shape index: {}]   ;;  %s783_s3 = inlined_call_operand.vmem [shape: bf16[4,128], index: 3, kind: input, shape index: {}]   ;;  %s784_s4 = inlined_call_operand.vmem [shape: f32[4,256], index: 4, kind: output, shape index: {}]  }
   0x1 LB: > { %s558_s16 = sadd.s32 4294967295, %s678_s15   ;;  %p562_p0 = scmp.ge.s32.totalorder %s678_s15, 1  ;;  %s678_s15 = sphi %s705_s15, %s14_s15  }
   0x2   : > { %p161_p1 = scmp.lt.s32.totalorder %s678_s15, 3 }
   0x4   : > { %p162_p2 = pnand %p562_p0, %p161_p1 }
   0x5   : > { %p185_p3 = scmp.lt.s32.totalorder (!%p162_p2), %s558_s16, 1 }
   0x6   : > { %165 = sbr.rel (%p162_p2) target bundleno = 623 (0x26f), region = 36 }
   0xb   : > { %s786_s16 = smov (!%p185_p3, %s558_s16), 1  ;;  %vm276_vm0 = vcmask 1043456   ;;  %v639_v2 = vld [vmem:[%s781_s1] sm:$0xff]  ;;  %v645_v3 = vld [vmem:[%s781_s1 + $0x30] sm:$0xff]  ;;  %vm251_vm1 = vcmask 64512   ;;  %v640_v4 = vld [vmem:[%s781_s1 + $0x8] sm:$0xff] }
   0xc   : > { %s563_s17 = sshll.u32 %s786_s16, 2  ;;  %v646_v5 = vld [vmem:[%s781_s1 + $0x38] sm:$0xff]  ;;  %v641_v6 = vld [vmem:[%s781_s1 + $0x10] sm:$0xff]  ;;  %v643_v8 = vld [vmem:[%s781_s1 + $0x20] sm:$0xff] }
   0xd   : > { %s188_s20 = scalar_lea.vmem %s780_s0, %s563_s17  ;;  %v642_v7 = vld [vmem:[%s781_s1 + $0x18] sm:$0xff]  ;;  %v644_v9 = vld [vmem:[%s781_s1 + $0x28] sm:$0xff]  ;;  %v651_v50 = vld [vmem:[%s782_s2 + $0x20] sm:$0xff]  ;;  %s192_s8 = scalar_lea.vmem %s784_s4, %s563_s17 }
   0xe   : > { %v210_v0 = vld [vmem:[%s188_s20] sm:$0xf]  ;;  %v652_v52 = vld [vmem:[%s782_s2 + $0x28] sm:$0xff]  ;;  %v653_v54 = vld [vmem:[%s782_s2 + $0x30] sm:$0xff] }
   0xf   : > { %v278_v1 = vsel %vm276_vm0, %v210_v0, 0  ;;  %v647_v51 = vld [vmem:[%s782_s2] sm:$0xff]  ;;  %v648_v53 = vld [vmem:[%s782_s2 + $0x8] sm:$0xff]  ;;  %v649_v55 = vld [vmem:[%s782_s2 + $0x10] sm:$0xff] }
  0x10   : > { %287 = vmatpush.bf16.msra.mxu0 %v278_v1  ;;  %655 = vmatpush.bf16.msra.mxu2 %v278_v1  ;;  %v654_v56 = vld [vmem:[%s782_s2 + $0x38] sm:$0xff] }
  0x11   : > { %v650_v57 = vld [vmem:[%s782_s2 + $0x18] sm:$0xff] }
  0x13   : > { %597 = vmatmul.msk.bf16.vlgmr.msra.gmra.mxu0 %vm251_vm1, %v639_v2  ;;  %603 = vmatmul.msk.bf16.vlgmr.msra.gmra.mxu2 %vm251_vm1, %v645_v3 }
  0x23   : > { %598 = vmatmul.msk.bf16.gmra.mxu0 %vm251_vm1, %v640_v4  ;;  %604 = vmatmul.msk.bf16.gmra.mxu2 %vm251_vm1, %v646_v5 }
  0x33   : > { %599 = vmatmul.msk.bf16.gmra.mxu0 %vm251_vm1, %v641_v6 }
  0x43   : > { %600 = vmatmul.msk.bf16.gmra.mxu0 %vm251_vm1, %v642_v7 }
  0x53   : > { %601 = vmatmul.msk.bf16.gmra.mxu0 %vm251_vm1, %v643_v8 }
  0x63   : > { %602 = vmatmul.msk.bf16.gmra.mxu0 %vm251_vm1, %v644_v9 }
  0x90   : > { %v289_v10 = vpop.f32.mrf.mxu0 }
  0x91   : > { %v329_v13 = vmax.f32 %v289_v10, 0.0 }
  0x96   : > { %v319_v11 = vpop.f32.mrf.mxu2 }
  0x97   : > { %v341_v25 = vmax.f32 %v319_v11, 0.0 }
  0x98   : > { %v291_v12 = vpop.f32.mrf.mxu0 }
  0x99   : > { %v330_v14 = vmax.f32 %v291_v12, 0.0 }
  0x9b   : > { %v361_v15 = vpack.c.bf16 %v330_v14, %v329_v13 }
  0x9e   : > { %v321_v16 = vpop.f32.mrf.mxu2 }
  0x9f   : > { %v342_v26 = vmax.f32 %v321_v16, 0.0 }
  0xa0   : > { %v294_v17 = vpop.f32.mrf.mxu0 }
  0xa1   : > { %v331_v20 = vmax.f32 %v294_v17, 0.0  ;;  %v367_v30 = vpack.c.bf16 %v342_v26, %v341_v25 }
  0xa6   : > { %v324_v18 = vpop.f32.mrf.mxu2 }
  0xa7   : > { %v343_v23 = vmax.f32 %v324_v18, 0.0 }
  0xa8   : > { %v296_v19 = vpop.f32.mrf.mxu0 }
  0xa9   : > { %v332_v21 = vmax.f32 %v296_v19, 0.0 }
  0xab   : > { %v362_v22 = vpack.c.bf16 %v332_v21, %v331_v20 }
  0xae   : > { %v326_v24 = vpop.f32.mrf.mxu2 }
  0xaf   : > { %v344_v27 = vmax.f32 %v326_v24, 0.0 }
  0xb0   : > { %v299_v28 = vpop.f32.mrf.mxu0 }
  0xb1   : > { %v368_v29 = vpack.c.bf16 %v344_v27, %v343_v23  ;;  %v333_v48 = vmax.f32 %v299_v28, 0.0 }
  0xb3   : > { %417 = vmatpush.bf16.msra.mxu1 %v368_v29  ;;  %656 = vmatpush.bf16.msra.mxu3 %v368_v29 }
  0xb7   : > { %418 = vmatpush.bf16.msra.mxu1 %v367_v30  ;;  %657 = vmatpush.bf16.msra.mxu3 %v367_v30 }
  0xb8   : > { %v301_v31 = vpop.f32.mrf.mxu0 }
  0xb9   : > { %v334_v46 = vmax.f32 %v301_v31, 0.0 }
  0xbb   : > { %v363_v49 = vpack.c.bf16 %v334_v46, %v333_v48 }
  0xc0   : > { %v304_v32 = vpop.f32.mrf.mxu0 }
  0xc1   : > { %v335_v45 = vmax.f32 %v304_v32, 0.0 }
  0xc8   : > { %v306_v33 = vpop.f32.mrf.mxu0 }
  0xc9   : > { %v336_v43 = vmax.f32 %v306_v33, 0.0 }
  0xcb   : > { %v364_v47 = vpack.c.bf16 %v336_v43, %v335_v45 }
  0xd0   : > { %v309_v34 = vpop.f32.mrf.mxu0 }
  0xd1   : > { %v337_v42 = vmax.f32 %v309_v34, 0.0  ;;  %v482_v34 = vld [vmem:[%s783_s3] sm:$0x3] }
  0xd8   : > { %v311_v35 = vpop.f32.mrf.mxu0 }
  0xd9   : > { %v338_v40 = vmax.f32 %v311_v35, 0.0 }
  0xdb   : > { %v365_v44 = vpack.c.bf16 %v338_v40, %v337_v42 }
  0xe0   : > { %v314_v36 = vpop.f32.mrf.mxu0 }
  0xe1   : > { %v339_v38 = vmax.f32 %v314_v36, 0.0 }
  0xe8   : > { %v316_v37 = vpop.f32.mrf.mxu0 }
  0xe9   : > { %v340_v39 = vmax.f32 %v316_v37, 0.0 }
  0xeb   : > { %v366_v41 = vpack.c.bf16 %v340_v39, %v339_v38 }
  0xed   : > { %419 = vmatpush.bf16.msra.mxu1 %v366_v41  ;;  %658 = vmatpush.bf16.msra.mxu3 %v366_v41 }
  0xf1   : > { %420 = vmatpush.bf16.msra.mxu1 %v365_v44  ;;  %659 = vmatpush.bf16.msra.mxu3 %v365_v44 }
  0xf5   : > { %421 = vmatpush.bf16.msra.mxu1 %v364_v47  ;;  %660 = vmatpush.bf16.msra.mxu3 %v364_v47 }
  0xf9   : > { %422 = vmatpush.bf16.msra.mxu1 %v363_v49  ;;  %661 = vmatpush.bf16.msra.mxu3 %v363_v49 }
  0xfd   : > { %423 = vmatpush.bf16.msra.mxu1 %v362_v22  ;;  %662 = vmatpush.bf16.msra.mxu3 %v362_v22 }
 0x101   : > { %424 = vmatpush.bf16.msra.mxu1 %v361_v15  ;;  %663 = vmatpush.bf16.msra.mxu3 %v361_v15 }
 0x104   : > { %445 = vmatmul.bf16.vlgmr.msra.gmra.mxu3 %v651_v50  ;;  %425 = vmatmul.bf16.vlgmr.msra.gmra.mxu1 %v647_v51 }
 0x114   : > { %450 = vmatmul.bf16.gmra.mxu3 %v652_v52  ;;  %430 = vmatmul.bf16.gmra.mxu1 %v648_v53 }
 0x124   : > { %455 = vmatmul.bf16.gmra.mxu3 %v653_v54  ;;  %435 = vmatmul.bf16.gmra.mxu1 %v649_v55 }
 0x134   : > { %460 = vmatmul.bf16.gmra.mxu3 %v654_v56  ;;  %440 = vmatmul.bf16.gmra.mxu1 %v650_v57 }
 0x181   : > { %v426_v58 = vpop.f32.mrf.mxu1 }
 0x182   : > { %v466_v30 = vmax.f32 %v426_v58, 0.0 }
 0x187   : > { %v446_v59 = vpop.f32.mrf.mxu3 }
 0x188   : > { %v474_v20 = vmax.f32 %v446_v59, 0.0 }
 0x189   : > { %v428_v61 = vpop.f32.mrf.mxu1 }
 0x18a   : > { %v467_v31 = vmax.f32 %v428_v61, 0.0 }
 0x18c   : > { %v483_v33 = vpack.c.bf16 %v467_v31, %v466_v30 }
 0x18f   : > { %v448_v60 = vpop.f32.mrf.mxu3 }
 0x190   : > { %v475_v17 = vmax.f32 %v448_v60, 0.0 }
 0x191   : > { %v431_v63 = vpop.f32.mrf.mxu1 }
 0x192   : > { %v487_v23 = vpack.c.bf16 %v475_v17, %v474_v20  ;;  %v468_v27 = vmax.f32 %v431_v63, 0.0 }
 0x197   : > { %v451_v62 = vpop.f32.mrf.mxu3 }
 0x198   : > { %v476_v16 = vmax.f32 %v451_v62, 0.0 }
 0x199   : > { %v433_v1 = vpop.f32.mrf.mxu1 }
 0x19a   : > { %v469_v28 = vmax.f32 %v433_v1, 0.0 }
 0x19c   : > { %v484_v32 = vpack.c.bf16 %v469_v28, %v468_v27 }
 0x19f   : > { %v453_v0 = vpop.f32.mrf.mxu3 }
 0x1a0   : > { %v477_v14 = vmax.f32 %v453_v0, 0.0 }
 0x1a1   : > { %v436_v3 = vpop.f32.mrf.mxu1 }
 0x1a2   : > { %v488_v18 = vpack.c.bf16 %v477_v14, %v476_v16  ;;  %v470_v24 = vmax.f32 %v436_v3, 0.0 }
 0x1a7   : > { %v456_v2 = vpop.f32.mrf.mxu3 }
 0x1a8   : > { %v478_v13 = vmax.f32 %v456_v2, 0.0 }
 0x1a9   : > { %v438_v5 = vpop.f32.mrf.mxu1 }
 0x1aa   : > { %v471_v25 = vmax.f32 %v438_v5, 0.0 }
 0x1ac   : > { %v485_v29 = vpack.c.bf16 %v471_v25, %v470_v24 }
 0x1af   : > { %v458_v4 = vpop.f32.mrf.mxu3 }
 0x1b0   : > { %v479_v11 = vmax.f32 %v458_v4, 0.0 }
 0x1b1   : > { %v441_v10 = vpop.f32.mrf.mxu1 }
 0x1b2   : > { %v489_v15 = vpack.c.bf16 %v479_v11, %v478_v13  ;;  %v472_v21 = vmax.f32 %v441_v10, 0.0 }
 0x1b7   : > { %v461_v6 = vpop.f32.mrf.mxu3 }
 0x1b8   : > { %v480_v8 = vmax.f32 %v461_v6, 0.0 }
 0x1b9   : > { %v443_v19 = vpop.f32.mrf.mxu1 }
 0x1ba   : > { %v473_v22 = vmax.f32 %v443_v19, 0.0 }
 0x1bc   : > { %v486_v26 = vpack.c.bf16 %v473_v22, %v472_v21 }
 0x1bf   : > { %v463_v7 = vpop.f32.mrf.mxu3 }
 0x1c0   : > { %v481_v9 = vmax.f32 %v463_v7, 0.0 }
 0x1c2   : > { %v490_v12 = vpack.c.bf16 %v481_v9, %v480_v8 }
 0x1c4   : > { %491 = vmatpush.bf16.msrb.mxu2 %v490_v12 }
 0x1c8   : > { %492 = vmatpush.bf16.msrb.mxu2 %v489_v15 }
 0x1cc   : > { %493 = vmatpush.bf16.msrb.mxu2 %v488_v18 }
 0x1d0   : > { %494 = vmatpush.bf16.msrb.mxu2 %v487_v23 }
 0x1d4   : > { %495 = vmatpush.bf16.msrb.mxu2 %v486_v26 }
 0x1d8   : > { %496 = vmatpush.bf16.msrb.mxu2 %v485_v29 }
 0x1dc   : > { %497 = vmatpush.bf16.msrb.mxu2 %v484_v32 }
 0x1e0   : > { %498 = vmatpush.bf16.msrb.mxu2 %v483_v33 }
 0x1e3   : > { %499 = vmatmul.bf16.vlgmr.msrb.gmra.mxu2 %v482_v34 }
 0x266   : > { %v500_v35 = vpop.f32.mrf.mxu2 }
 0x267   : > { %504 = vst [vmem:[%s192_s8] sm:$0xf] %v500_v35 }
 0x26e   : > { %v502_v36 = vpop.f32.mrf.mxu2 }
 0x26f PF: > { %s14_s15 = sadd.s32 1, %s678_s15  }
 0x270   : > { %p11_p4 = scmp.ge.s32.totalorder %s14_s15, 4  }
 0x272   :  { %13 = sbr.rel (!%p11_p4) target bundleno = 1 (0x1), region = 66 }

</bundles_post_ra>
